<compile_context>
chip_gen: v7x
topology: tpu7x:2x2x1
jax: 0.10.0
libtpu: 0.0.40
codegen_flags: <defaults>
</compile_context>

<pallas_src>
import math

import jax
import jax.numpy as jnp
from jax import lax
from jax.experimental import pallas as pl
from jax.experimental.pallas import tpu as pltpu


# ----------------------------- config (small) -------------------------------
B = 2          # batch
T = 8          # sequence length (block_size)
C = 32         # n_embd
N_HEAD = 4
HEAD_DIM = C // N_HEAD
LN_EPS = 1e-5

# rows of the packed (8, 4C) vector array
_ROW_LN1_W, _ROW_LN1_B, _ROW_LN2_W, _ROW_LN2_B = 0, 1, 2, 3
_ROW_B_PROJ, _ROW_B_FC2, _ROW_B_ATTN, _ROW_B_FC = 4, 5, 6, 7


# ------------------------------ kernel helpers --------------------------------
def _layernorm(h, w, b):
    mu = jnp.mean(h, axis=-1, keepdims=True)
    var = jnp.mean((h - mu) * (h - mu), axis=-1, keepdims=True)
    return (h - mu) * lax.rsqrt(var + LN_EPS) * w + b


def _gelu_exact(h):
    # nn.GELU() default: exact erf-based GELU.
    return 0.5 * h * (1.0 + lax.erf(h * (1.0 / math.sqrt(2.0))))


# ------------------------------ kernel body ----------------------------------
def block_kernel(x_ref, vecs_ref, wattn_ref, wproj_ref, wfc_ref, wfc2_ref,
                 out_ref):
    """Single step: whole (B*T, C) activation + all weights live in VMEM."""
    x = x_ref[...]                                   # (B*T, C) float32
    vecs = vecs_ref[...]                             # (8, 4C) packed f32

    ln1_w = vecs[_ROW_LN1_W:_ROW_LN1_W + 1, 0:C]
    ln1_b = vecs[_ROW_LN1_B:_ROW_LN1_B + 1, 0:C]
    ln2_w = vecs[_ROW_LN2_W:_ROW_LN2_W + 1, 0:C]
    ln2_b = vecs[_ROW_LN2_B:_ROW_LN2_B + 1, 0:C]
    b_proj = vecs[_ROW_B_PROJ:_ROW_B_PROJ + 1, 0:C]
    b_fc2 = vecs[_ROW_B_FC2:_ROW_B_FC2 + 1, 0:C]
    b_attn = vecs[_ROW_B_ATTN:_ROW_B_ATTN + 1, 0:3 * C]   # q-part pre-scaled
    b_fc = vecs[_ROW_B_FC:_ROW_B_FC + 1, :]               # (1, 4C)

    # ---- ln_1 + causal self-attention ----
    h1 = _layernorm(x, ln1_w, ln1_b).astype(jnp.bfloat16)

    # One fused QKV matmul (q columns of w_attn / b_attn carry the 1/sqrt(hd)
    # scale), f32 accumulate + bias, then ONE cast of the whole tensor to bf16.
    qkv = jnp.dot(h1, wattn_ref[...],
                  preferred_element_type=jnp.float32) + b_attn   # (B*T, 3C)
    qkv = qkv.astype(jnp.bfloat16)

    q3 = qkv[:, 0 * C:1 * C].reshape(B, T, C)        # (B, T, C) bf16 (scaled)
    k3 = qkv[:, 1 * C:2 * C].reshape(B, T, C)
    v3 = qkv[:, 2 * C:3 * C].reshape(B, T, C)

    rows = lax.broadcasted_iota(jnp.int32, (T, T), 0)
    cols = lax.broadcasted_iota(jnp.int32, (T, T), 1)
    mask_add = jnp.where(rows >= cols, 0.0, -1e30)[None, :, :]   # (1, T, T)

    # Heads: per-head scores/softmax, results lane-concatenated and fed to a
    # SINGLE (B*T, C) @ (C, C) output projection (one MXU push, K=32).
    ys = []
    for h in range(N_HEAD):                          # static, 4 iterations
        sl = slice(h * HEAD_DIM, (h + 1) * HEAD_DIM)
        qh = q3[:, :, sl]                            # (B, T, hd) bf16
        kh = k3[:, :, sl]
        vh = v3[:, :, sl]

        s = jnp.einsum("bqd,bkd->bqk", qh, kh,
                       preferred_element_type=jnp.float32)       # pre-scaled
        s = s + mask_add
        s = s - jnp.max(s, axis=-1, keepdims=True)
        p = jnp.exp(s)
        p = p * pl.reciprocal(jnp.sum(p, axis=-1, keepdims=True), approx=True)

        ys.append(jnp.einsum("bqk,bkd->bqd", p.astype(jnp.bfloat16), vh,
                             preferred_element_type=jnp.float32))  # (B, T, hd)

    y = jnp.concatenate(ys, axis=-1).reshape(B * T, C).astype(jnp.bfloat16)
    attn = jnp.dot(y, wproj_ref[...],
                   preferred_element_type=jnp.float32) + b_proj

    x2 = x + attn                                    # residual 1 (f32)

    # ---- ln_2 + MLP ----
    h2 = _layernorm(x2, ln2_w, ln2_b).astype(jnp.bfloat16)
    ff = jnp.dot(h2, wfc_ref[...], preferred_element_type=jnp.float32) + b_fc
    ff = _gelu_exact(ff).astype(jnp.bfloat16)
    ff = jnp.dot(ff, wfc2_ref[...], preferred_element_type=jnp.float32) + b_fc2

    out_ref[...] = x2 + ff                           # residual 2


# --------------------------- one-time parameter prep ---------------------------
def prepare_params(p):
    """Layout plumbing done ONCE (outside the per-call path):
       scale-fold into q, bf16 weight casts, and packing all small vectors
       into a single (8, 4C) f32 array."""
    scale = 1.0 / math.sqrt(HEAD_DIM)

    w_attn = p["w_attn"].astype(jnp.float32)         # (C, 3C)
    w_attn = w_attn.at[:, 0:C].multiply(scale)       # fold scale into Q cols
    b_attn = p["b_attn"].astype(jnp.float32)         # (1, 3C)
    b_attn = b_attn.at[:, 0:C].multiply(scale)

    vecs = jnp.zeros((8, 4 * C), jnp.float32)
    vecs = vecs.at[_ROW_LN1_W, 0:C].set(p["ln1_w"][0])
    vecs = vecs.at[_ROW_LN1_B, 0:C].set(p["ln1_b"][0])
    vecs = vecs.at[_ROW_LN2_W, 0:C].set(p["ln2_w"][0])
    vecs = vecs.at[_ROW_LN2_B, 0:C].set(p["ln2_b"][0])
    vecs = vecs.at[_ROW_B_PROJ, 0:C].set(p["b_proj"][0])
    vecs = vecs.at[_ROW_B_FC2, 0:C].set(p["b_fc2"][0])
    vecs = vecs.at[_ROW_B_ATTN, 0:3 * C].set(b_attn[0])
    vecs = vecs.at[_ROW_B_FC, :].set(p["b_fc"][0])

    return {
        "vecs": vecs,                                # (8, 128) f32
        "w_attn": w_attn.astype(jnp.bfloat16),       # (C, 3C)
        "w_proj": p["w_proj"].astype(jnp.bfloat16),  # (C, C)
        "w_fc": p["w_fc"].astype(jnp.bfloat16),      # (C, 4C)
        "w_fc2": p["w_fc2"].astype(jnp.bfloat16),    # (4C, C)
    }


# ------------------------------ wrapper ---------------------------------------
def gpt2_block(x, prep):
    """x: (B, T, C) float32; prep: output of prepare_params."""
    b_, t_, c_ = x.shape
    assert (b_, t_, c_) == (B, T, C)
    x2d = x.reshape(B * T, C)

    vmem = pl.BlockSpec(memory_space=pltpu.MemorySpace.VMEM)
    out2d = pl.pallas_call(
        block_kernel,
        out_shape=jax.ShapeDtypeStruct((B * T, C), jnp.float32),
        in_specs=[vmem] * 6,
        out_specs=vmem,
    )(x2d, prep["vecs"], prep["w_attn"], prep["w_proj"],
      prep["w_fc"], prep["w_fc2"])
    return out2d.reshape(B, T, C)


# --------------------------- reference (plain JAX, f32) ------------------------
def gpt2_block_ref(x, p):
    def ln(h, w, b):
        mu = jnp.mean(h, axis=-1, keepdims=True)
        var = jnp.mean((h - mu) ** 2, axis=-1, keepdims=True)
        return (h - mu) / jnp.sqrt(var + LN_EPS) * w + b

    h1 = ln(x, p["ln1_w"][0], p["ln1_b"][0])
    qkv = h1 @ p["w_attn"] + p["b_attn"][0]
    q, k, v = jnp.split(qkv, 3, axis=-1)

    def heads(a):  # (B,T,C) -> (B,H,T,hd)
        return a.reshape(B, T, N_HEAD, HEAD_DIM).transpose(0, 2, 1, 3)

    q, k, v = heads(q), heads(k), heads(v)
    s = jnp.einsum("bhqd,bhkd->bhqk", q, k) / math.sqrt(HEAD_DIM)
    mask = jnp.tril(jnp.ones((T, T), bool))
    s = jnp.where(mask, s, -1e30)
    att = jax.nn.softmax(s, axis=-1)
    y = jnp.einsum("bhqk,bhkd->bhqd", att, v).transpose(0, 2, 1, 3).reshape(B, T, C)
    y = y @ p["w_proj"] + p["b_proj"][0]
    x2 = x + y
    h2 = ln(x2, p["ln2_w"][0], p["ln2_b"][0])
    ff = h2 @ p["w_fc"] + p["b_fc"][0]
    ff = 0.5 * ff * (1.0 + lax.erf(ff / math.sqrt(2.0)))
    ff = ff @ p["w_fc2"] + p["b_fc2"][0]
    return x2 + ff


# ------------------------------- main ------------------------------------------
if __name__ == "__main__":
    key = jax.random.PRNGKey(0)
    ks = jax.random.split(key, 16)

    def nrm(k, shape, scale=0.02):
        return (scale * jax.random.normal(k, shape)).astype(jnp.float32)

    # Parameters (Linear weights stored PyTorch-style (out, in), transposed to
    # (in, out) for the kernel). 1-D params kept as (1, D) for TPU layout.
    params = {
        "ln1_w": jnp.ones((1, C), jnp.float32),
        "ln1_b": jnp.zeros((1, C), jnp.float32),
        "w_attn": nrm(ks[0], (3 * C, C)).T,          # (C, 3C)
        "b_attn": nrm(ks[1], (1, 3 * C)),
        "w_proj": nrm(ks[2], (C, C)).T,              # (C, C)
        "b_proj": nrm(ks[3], (1, C)),
        "ln2_w": jnp.ones((1, C), jnp.float32),
        "ln2_b": jnp.zeros((1, C), jnp.float32),
        "w_fc": nrm(ks[4], (4 * C, C)).T,            # (C, 4C)
        "b_fc": nrm(ks[5], (1, 4 * C)),
        "w_fc2": nrm(ks[6], (C, 4 * C)).T,           # (4C, C)
        "b_fc2": nrm(ks[7], (1, C)),
    }

    x = jax.random.normal(ks[8], (B, T, C), dtype=jnp.float32)

    # One-time parameter prep (out of the per-call jit path).
    prep = jax.tree_util.tree_map(jax.block_until_ready, prepare_params(params))

    out = jax.block_until_ready(jax.jit(gpt2_block)(x, prep))
    ref = jax.block_until_ready(gpt2_block_ref(x, params))

    assert out.shape == (B, T, C)
    # bf16 MXU operands + approx softmax reciprocal => slightly looser tol than f32.
    assert jnp.allclose(out, ref, atol=2e-3, rtol=2e-3), (
        float(jnp.max(jnp.abs(out - ref))))

    print("KERNEL_OK")
</pallas_src>

<mosaic_0001>
module attributes {stable_mosaic.version = 11 : i64} {
  func.func @block_kernel(%arg0: memref<16x32xf32, #tpu.memory_space<vmem>>, %arg1: memref<8x128xf32, #tpu.memory_space<vmem>>, %arg2: memref<32x96xbf16, #tpu.memory_space<vmem>>, %arg3: memref<32x32xbf16, #tpu.memory_space<vmem>>, %arg4: memref<32x128xbf16, #tpu.memory_space<vmem>>, %arg5: memref<128x32xbf16, #tpu.memory_space<vmem>>, %arg6: memref<16x32xf32, #tpu.memory_space<vmem>>) attributes {dimension_semantics = [], scalar_prefetch = 0 : i64, scratch_operands = 0 : i64, tpu.core_type = #tpu.core_type<tc>} {
    %c0 = arith.constant 0 : index
    %c0_0 = arith.constant 0 : index
    %0 = vector.load %arg0[%c0, %c0_0] : memref<16x32xf32, #tpu.memory_space<vmem>>, vector<16x32xf32>
    %c0_1 = arith.constant 0 : index
    %c0_2 = arith.constant 0 : index
    %1 = vector.load %arg1[%c0_1, %c0_2] : memref<8x128xf32, #tpu.memory_space<vmem>>, vector<8x128xf32>
    %2 = vector.extract_strided_slice %1 {offsets = [0, 0], sizes = [1, 32], strides = [1, 1]} : vector<8x128xf32> to vector<1x32xf32>
    %3 = vector.extract_strided_slice %1 {offsets = [1, 0], sizes = [1, 32], strides = [1, 1]} : vector<8x128xf32> to vector<1x32xf32>
    %4 = vector.extract_strided_slice %1 {offsets = [2, 0], sizes = [1, 32], strides = [1, 1]} : vector<8x128xf32> to vector<1x32xf32>
    %5 = vector.extract_strided_slice %1 {offsets = [3, 0], sizes = [1, 32], strides = [1, 1]} : vector<8x128xf32> to vector<1x32xf32>
    %6 = vector.extract_strided_slice %1 {offsets = [4, 0], sizes = [1, 32], strides = [1, 1]} : vector<8x128xf32> to vector<1x32xf32>
    %7 = vector.extract_strided_slice %1 {offsets = [5, 0], sizes = [1, 32], strides = [1, 1]} : vector<8x128xf32> to vector<1x32xf32>
    %8 = vector.extract_strided_slice %1 {offsets = [6, 0], sizes = [1, 96], strides = [1, 1]} : vector<8x128xf32> to vector<1x96xf32>
    %9 = vector.extract_strided_slice %1 {offsets = [7, 0], sizes = [1, 128], strides = [1, 1]} : vector<8x128xf32> to vector<1x128xf32>
    %cst = arith.constant dense<0.000000e+00> : vector<16xf32>
    %10 = vector.multi_reduction <add>, %0, %cst [1] : vector<16x32xf32> to vector<16xf32>
    %11 = vector.shape_cast %10 : vector<16xf32> to vector<16x1xf32>
    %cst_3 = arith.constant 3.200000e+01 : f32
    %12 = vector.broadcast %cst_3 : f32 to vector<16x1xf32>
    %13 = arith.divf %11, %12 : vector<16x1xf32>
    %14 = vector.broadcast %13 : vector<16x1xf32> to vector<16x32xf32>
    %15 = arith.subf %0, %14 : vector<16x32xf32>
    %16 = vector.broadcast %13 : vector<16x1xf32> to vector<16x32xf32>
    %17 = arith.subf %0, %16 : vector<16x32xf32>
    %18 = arith.mulf %15, %17 : vector<16x32xf32>
    %cst_4 = arith.constant dense<0.000000e+00> : vector<16xf32>
    %19 = vector.multi_reduction <add>, %18, %cst_4 [1] : vector<16x32xf32> to vector<16xf32>
    %20 = vector.shape_cast %19 : vector<16xf32> to vector<16x1xf32>
    %cst_5 = arith.constant 3.200000e+01 : f32
    %21 = vector.broadcast %cst_5 : f32 to vector<16x1xf32>
    %22 = arith.divf %20, %21 : vector<16x1xf32>
    %23 = vector.broadcast %13 : vector<16x1xf32> to vector<16x32xf32>
    %24 = arith.subf %0, %23 : vector<16x32xf32>
    %cst_6 = arith.constant 9.99999974E-6 : f32
    %25 = vector.broadcast %cst_6 : f32 to vector<16x1xf32>
    %26 = arith.addf %22, %25 : vector<16x1xf32>
    %27 = math.rsqrt %26 : vector<16x1xf32>
    %28 = vector.broadcast %27 : vector<16x1xf32> to vector<16x32xf32>
    %29 = arith.mulf %24, %28 : vector<16x32xf32>
    %30 = vector.broadcast %2 : vector<1x32xf32> to vector<16x32xf32>
    %31 = arith.mulf %29, %30 : vector<16x32xf32>
    %32 = vector.broadcast %3 : vector<1x32xf32> to vector<16x32xf32>
    %33 = arith.addf %31, %32 : vector<16x32xf32>
    %34 = arith.truncf %33 : vector<16x32xf32> to vector<16x32xbf16>
    %c0_7 = arith.constant 0 : index
    %c0_8 = arith.constant 0 : index
    %35 = vector.load %arg2[%c0_7, %c0_8] : memref<32x96xbf16, #tpu.memory_space<vmem>>, vector<32x96xbf16>
    %cst_9 = arith.constant dense<0.000000e+00> : vector<16x96xf32>
    %36 = tpu.matmul %34, %35, %cst_9 {dimension_numbers = #tpu.dot_dimension_numbers<[1], [0], [0], [1], [0, 0, 1, 1], [], []>} : vector<16x32xbf16>, vector<32x96xbf16>, vector<16x96xf32> -> vector<16x96xf32>
    %37 = vector.broadcast %8 : vector<1x96xf32> to vector<16x96xf32>
    %38 = arith.addf %36, %37 : vector<16x96xf32>
    %39 = arith.truncf %38 : vector<16x96xf32> to vector<16x96xbf16>
    %40 = vector.extract_strided_slice %39 {offsets = [0, 0], sizes = [16, 32], strides = [1, 1]} : vector<16x96xbf16> to vector<16x32xbf16>
    %41 = vector.shape_cast %40 : vector<16x32xbf16> to vector<2x8x32xbf16>
    %42 = vector.extract_strided_slice %39 {offsets = [0, 32], sizes = [16, 32], strides = [1, 1]} : vector<16x96xbf16> to vector<16x32xbf16>
    %43 = vector.shape_cast %42 : vector<16x32xbf16> to vector<2x8x32xbf16>
    %44 = vector.extract_strided_slice %39 {offsets = [0, 64], sizes = [16, 32], strides = [1, 1]} : vector<16x96xbf16> to vector<16x32xbf16>
    %45 = vector.shape_cast %44 : vector<16x32xbf16> to vector<2x8x32xbf16>
    %46 = tpu.iota {dimensions = array<i32: 0>} : vector<8x8xi32>
    %47 = tpu.iota {dimensions = array<i32: 1>} : vector<8x8xi32>
    %48 = arith.cmpi sge, %46, %47 : vector<8x8xi32>
    %cst_10 = arith.constant 0.000000e+00 : f32
    %cst_11 = arith.constant -1.000000e+30 : f32
    %49 = vector.broadcast %cst_10 : f32 to vector<8x8xf32>
    %50 = vector.broadcast %cst_11 : f32 to vector<8x8xf32>
    %51 = arith.select %48, %49, %50 : vector<8x8xi1>, vector<8x8xf32>
    %52 = vector.shape_cast %51 : vector<8x8xf32> to vector<1x8x8xf32>
    %53 = vector.extract_strided_slice %41 {offsets = [0, 0, 0], sizes = [2, 8, 8], strides = [1, 1, 1]} : vector<2x8x32xbf16> to vector<2x8x8xbf16>
    %54 = vector.extract_strided_slice %43 {offsets = [0, 0, 0], sizes = [2, 8, 8], strides = [1, 1, 1]} : vector<2x8x32xbf16> to vector<2x8x8xbf16>
    %55 = vector.extract_strided_slice %45 {offsets = [0, 0, 0], sizes = [2, 8, 8], strides = [1, 1, 1]} : vector<2x8x32xbf16> to vector<2x8x8xbf16>
    "tpu.trace_start"() <{level = 10 : i32, message = "bqd,bkd->bqk"}> : () -> ()
    %cst_12 = arith.constant dense<0.000000e+00> : vector<2x8x8xf32>
    %56 = tpu.matmul %53, %54, %cst_12 {dimension_numbers = #tpu.dot_dimension_numbers<[2], [2], [1], [1], [0, 0, 0, 1, 1, 1], [0], [0]>} : vector<2x8x8xbf16>, vector<2x8x8xbf16>, vector<2x8x8xf32> -> vector<2x8x8xf32>
    "tpu.trace_stop"() : () -> ()
    %57 = vector.broadcast %52 : vector<1x8x8xf32> to vector<2x8x8xf32>
    %58 = arith.addf %56, %57 : vector<2x8x8xf32>
    %cst_13 = arith.constant dense<0xFF800000> : vector<2x8xf32>
    %59 = vector.multi_reduction <maximumf>, %58, %cst_13 [2] : vector<2x8x8xf32> to vector<2x8xf32>
    %60 = vector.shape_cast %59 : vector<2x8xf32> to vector<2x8x1xf32>
    %61 = vector.broadcast %60 : vector<2x8x1xf32> to vector<2x8x8xf32>
    %62 = arith.subf %58, %61 : vector<2x8x8xf32>
    %63 = math.exp %62 : vector<2x8x8xf32>
    %cst_14 = arith.constant dense<0.000000e+00> : vector<2x8xf32>
    %64 = vector.multi_reduction <add>, %63, %cst_14 [2] : vector<2x8x8xf32> to vector<2x8xf32>
    %65 = vector.shape_cast %64 : vector<2x8xf32> to vector<2x8x1xf32>
    %66 = tpu.reciprocal %65 {approx = true} : vector<2x8x1xf32> -> vector<2x8x1xf32>
    %67 = vector.broadcast %66 : vector<2x8x1xf32> to vector<2x8x8xf32>
    %68 = arith.mulf %63, %67 : vector<2x8x8xf32>
    %69 = arith.truncf %68 : vector<2x8x8xf32> to vector<2x8x8xbf16>
    "tpu.trace_start"() <{level = 10 : i32, message = "bqk,bkd->bqd"}> : () -> ()
    %cst_15 = arith.constant dense<0.000000e+00> : vector<2x8x8xf32>
    %70 = tpu.matmul %69, %55, %cst_15 {dimension_numbers = #tpu.dot_dimension_numbers<[2], [1], [1], [2], [0, 0, 0, 1, 1, 2], [0], [0]>} : vector<2x8x8xbf16>, vector<2x8x8xbf16>, vector<2x8x8xf32> -> vector<2x8x8xf32>
    "tpu.trace_stop"() : () -> ()
    %71 = vector.extract_strided_slice %41 {offsets = [0, 0, 8], sizes = [2, 8, 8], strides = [1, 1, 1]} : vector<2x8x32xbf16> to vector<2x8x8xbf16>
    %72 = vector.extract_strided_slice %43 {offsets = [0, 0, 8], sizes = [2, 8, 8], strides = [1, 1, 1]} : vector<2x8x32xbf16> to vector<2x8x8xbf16>
    %73 = vector.extract_strided_slice %45 {offsets = [0, 0, 8], sizes = [2, 8, 8], strides = [1, 1, 1]} : vector<2x8x32xbf16> to vector<2x8x8xbf16>
    "tpu.trace_start"() <{level = 10 : i32, message = "bqd,bkd->bqk"}> : () -> ()
    %cst_16 = arith.constant dense<0.000000e+00> : vector<2x8x8xf32>
    %74 = tpu.matmul %71, %72, %cst_16 {dimension_numbers = #tpu.dot_dimension_numbers<[2], [2], [1], [1], [0, 0, 0, 1, 1, 1], [0], [0]>} : vector<2x8x8xbf16>, vector<2x8x8xbf16>, vector<2x8x8xf32> -> vector<2x8x8xf32>
    "tpu.trace_stop"() : () -> ()
    %75 = vector.broadcast %52 : vector<1x8x8xf32> to vector<2x8x8xf32>
    %76 = arith.addf %74, %75 : vector<2x8x8xf32>
    %cst_17 = arith.constant dense<0xFF800000> : vector<2x8xf32>
    %77 = vector.multi_reduction <maximumf>, %76, %cst_17 [2] : vector<2x8x8xf32> to vector<2x8xf32>
    %78 = vector.shape_cast %77 : vector<2x8xf32> to vector<2x8x1xf32>
    %79 = vector.broadcast %78 : vector<2x8x1xf32> to vector<2x8x8xf32>
    %80 = arith.subf %76, %79 : vector<2x8x8xf32>
    %81 = math.exp %80 : vector<2x8x8xf32>
    %cst_18 = arith.constant dense<0.000000e+00> : vector<2x8xf32>
    %82 = vector.multi_reduction <add>, %81, %cst_18 [2] : vector<2x8x8xf32> to vector<2x8xf32>
    %83 = vector.shape_cast %82 : vector<2x8xf32> to vector<2x8x1xf32>
    %84 = tpu.reciprocal %83 {approx = true} : vector<2x8x1xf32> -> vector<2x8x1xf32>
    %85 = vector.broadcast %84 : vector<2x8x1xf32> to vector<2x8x8xf32>
    %86 = arith.mulf %81, %85 : vector<2x8x8xf32>
    %87 = arith.truncf %86 : vector<2x8x8xf32> to vector<2x8x8xbf16>
    "tpu.trace_start"() <{level = 10 : i32, message = "bqk,bkd->bqd"}> : () -> ()
    %cst_19 = arith.constant dense<0.000000e+00> : vector<2x8x8xf32>
    %88 = tpu.matmul %87, %73, %cst_19 {dimension_numbers = #tpu.dot_dimension_numbers<[2], [1], [1], [2], [0, 0, 0, 1, 1, 2], [0], [0]>} : vector<2x8x8xbf16>, vector<2x8x8xbf16>, vector<2x8x8xf32> -> vector<2x8x8xf32>
    "tpu.trace_stop"() : () -> ()
    %89 = vector.extract_strided_slice %41 {offsets = [0, 0, 16], sizes = [2, 8, 8], strides = [1, 1, 1]} : vector<2x8x32xbf16> to vector<2x8x8xbf16>
    %90 = vector.extract_strided_slice %43 {offsets = [0, 0, 16], sizes = [2, 8, 8], strides = [1, 1, 1]} : vector<2x8x32xbf16> to vector<2x8x8xbf16>
    %91 = vector.extract_strided_slice %45 {offsets = [0, 0, 16], sizes = [2, 8, 8], strides = [1, 1, 1]} : vector<2x8x32xbf16> to vector<2x8x8xbf16>
    "tpu.trace_start"() <{level = 10 : i32, message = "bqd,bkd->bqk"}> : () -> ()
    %cst_20 = arith.constant dense<0.000000e+00> : vector<2x8x8xf32>
    %92 = tpu.matmul %89, %90, %cst_20 {dimension_numbers = #tpu.dot_dimension_numbers<[2], [2], [1], [1], [0, 0, 0, 1, 1, 1], [0], [0]>} : vector<2x8x8xbf16>, vector<2x8x8xbf16>, vector<2x8x8xf32> -> vector<2x8x8xf32>
    "tpu.trace_stop"() : () -> ()
    %93 = vector.broadcast %52 : vector<1x8x8xf32> to vector<2x8x8xf32>
    %94 = arith.addf %92, %93 : vector<2x8x8xf32>
    %cst_21 = arith.constant dense<0xFF800000> : vector<2x8xf32>
    %95 = vector.multi_reduction <maximumf>, %94, %cst_21 [2] : vector<2x8x8xf32> to vector<2x8xf32>
    %96 = vector.shape_cast %95 : vector<2x8xf32> to vector<2x8x1xf32>
    %97 = vector.broadcast %96 : vector<2x8x1xf32> to vector<2x8x8xf32>
    %98 = arith.subf %94, %97 : vector<2x8x8xf32>
    %99 = math.exp %98 : vector<2x8x8xf32>
    %cst_22 = arith.constant dense<0.000000e+00> : vector<2x8xf32>
    %100 = vector.multi_reduction <add>, %99, %cst_22 [2] : vector<2x8x8xf32> to vector<2x8xf32>
    %101 = vector.shape_cast %100 : vector<2x8xf32> to vector<2x8x1xf32>
    %102 = tpu.reciprocal %101 {approx = true} : vector<2x8x1xf32> -> vector<2x8x1xf32>
    %103 = vector.broadcast %102 : vector<2x8x1xf32> to vector<2x8x8xf32>
    %104 = arith.mulf %99, %103 : vector<2x8x8xf32>
    %105 = arith.truncf %104 : vector<2x8x8xf32> to vector<2x8x8xbf16>
    "tpu.trace_start"() <{level = 10 : i32, message = "bqk,bkd->bqd"}> : () -> ()
    %cst_23 = arith.constant dense<0.000000e+00> : vector<2x8x8xf32>
    %106 = tpu.matmul %105, %91, %cst_23 {dimension_numbers = #tpu.dot_dimension_numbers<[2], [1], [1], [2], [0, 0, 0, 1, 1, 2], [0], [0]>} : vector<2x8x8xbf16>, vector<2x8x8xbf16>, vector<2x8x8xf32> -> vector<2x8x8xf32>
    "tpu.trace_stop"() : () -> ()
    %107 = vector.extract_strided_slice %41 {offsets = [0, 0, 24], sizes = [2, 8, 8], strides = [1, 1, 1]} : vector<2x8x32xbf16> to vector<2x8x8xbf16>
    %108 = vector.extract_strided_slice %43 {offsets = [0, 0, 24], sizes = [2, 8, 8], strides = [1, 1, 1]} : vector<2x8x32xbf16> to vector<2x8x8xbf16>
    %109 = vector.extract_strided_slice %45 {offsets = [0, 0, 24], sizes = [2, 8, 8], strides = [1, 1, 1]} : vector<2x8x32xbf16> to vector<2x8x8xbf16>
    "tpu.trace_start"() <{level = 10 : i32, message = "bqd,bkd->bqk"}> : () -> ()
    %cst_24 = arith.constant dense<0.000000e+00> : vector<2x8x8xf32>
    %110 = tpu.matmul %107, %108, %cst_24 {dimension_numbers = #tpu.dot_dimension_numbers<[2], [2], [1], [1], [0, 0, 0, 1, 1, 1], [0], [0]>} : vector<2x8x8xbf16>, vector<2x8x8xbf16>, vector<2x8x8xf32> -> vector<2x8x8xf32>
    "tpu.trace_stop"() : () -> ()
    %111 = vector.broadcast %52 : vector<1x8x8xf32> to vector<2x8x8xf32>
    %112 = arith.addf %110, %111 : vector<2x8x8xf32>
    %cst_25 = arith.constant dense<0xFF800000> : vector<2x8xf32>
    %113 = vector.multi_reduction <maximumf>, %112, %cst_25 [2] : vector<2x8x8xf32> to vector<2x8xf32>
    %114 = vector.shape_cast %113 : vector<2x8xf32> to vector<2x8x1xf32>
    %115 = vector.broadcast %114 : vector<2x8x1xf32> to vector<2x8x8xf32>
    %116 = arith.subf %112, %115 : vector<2x8x8xf32>
    %117 = math.exp %116 : vector<2x8x8xf32>
    %cst_26 = arith.constant dense<0.000000e+00> : vector<2x8xf32>
    %118 = vector.multi_reduction <add>, %117, %cst_26 [2] : vector<2x8x8xf32> to vector<2x8xf32>
    %119 = vector.shape_cast %118 : vector<2x8xf32> to vector<2x8x1xf32>
    %120 = tpu.reciprocal %119 {approx = true} : vector<2x8x1xf32> -> vector<2x8x1xf32>
    %121 = vector.broadcast %120 : vector<2x8x1xf32> to vector<2x8x8xf32>
    %122 = arith.mulf %117, %121 : vector<2x8x8xf32>
    %123 = arith.truncf %122 : vector<2x8x8xf32> to vector<2x8x8xbf16>
    "tpu.trace_start"() <{level = 10 : i32, message = "bqk,bkd->bqd"}> : () -> ()
    %cst_27 = arith.constant dense<0.000000e+00> : vector<2x8x8xf32>
    %124 = tpu.matmul %123, %109, %cst_27 {dimension_numbers = #tpu.dot_dimension_numbers<[2], [1], [1], [2], [0, 0, 0, 1, 1, 2], [0], [0]>} : vector<2x8x8xbf16>, vector<2x8x8xbf16>, vector<2x8x8xf32> -> vector<2x8x8xf32>
    "tpu.trace_stop"() : () -> ()
    %125 = tpu.concatenate %70, %88, %106, %124 in 2 : vector<2x8x8xf32>, vector<2x8x8xf32>, vector<2x8x8xf32>, vector<2x8x8xf32> -> vector<2x8x32xf32>
    %126 = vector.shape_cast %125 : vector<2x8x32xf32> to vector<16x32xf32>
    %127 = arith.truncf %126 : vector<16x32xf32> to vector<16x32xbf16>
    %c0_28 = arith.constant 0 : index
    %c0_29 = arith.constant 0 : index
    %128 = vector.load %arg3[%c0_28, %c0_29] : memref<32x32xbf16, #tpu.memory_space<vmem>>, vector<32x32xbf16>
    %cst_30 = arith.constant dense<0.000000e+00> : vector<16x32xf32>
    %129 = tpu.matmul %127, %128, %cst_30 {dimension_numbers = #tpu.dot_dimension_numbers<[1], [0], [0], [1], [0, 0, 1, 1], [], []>} : vector<16x32xbf16>, vector<32x32xbf16>, vector<16x32xf32> -> vector<16x32xf32>
    %130 = vector.broadcast %6 : vector<1x32xf32> to vector<16x32xf32>
    %131 = arith.addf %129, %130 : vector<16x32xf32>
    %132 = arith.addf %0, %131 : vector<16x32xf32>
    %cst_31 = arith.constant dense<0.000000e+00> : vector<16xf32>
    %133 = vector.multi_reduction <add>, %132, %cst_31 [1] : vector<16x32xf32> to vector<16xf32>
    %134 = vector.shape_cast %133 : vector<16xf32> to vector<16x1xf32>
    %cst_32 = arith.constant 3.200000e+01 : f32
    %135 = vector.broadcast %cst_32 : f32 to vector<16x1xf32>
    %136 = arith.divf %134, %135 : vector<16x1xf32>
    %137 = vector.broadcast %136 : vector<16x1xf32> to vector<16x32xf32>
    %138 = arith.subf %132, %137 : vector<16x32xf32>
    %139 = vector.broadcast %136 : vector<16x1xf32> to vector<16x32xf32>
    %140 = arith.subf %132, %139 : vector<16x32xf32>
    %141 = arith.mulf %138, %140 : vector<16x32xf32>
    %cst_33 = arith.constant dense<0.000000e+00> : vector<16xf32>
    %142 = vector.multi_reduction <add>, %141, %cst_33 [1] : vector<16x32xf32> to vector<16xf32>
    %143 = vector.shape_cast %142 : vector<16xf32> to vector<16x1xf32>
    %cst_34 = arith.constant 3.200000e+01 : f32
    %144 = vector.broadcast %cst_34 : f32 to vector<16x1xf32>
    %145 = arith.divf %143, %144 : vector<16x1xf32>
    %146 = vector.broadcast %136 : vector<16x1xf32> to vector<16x32xf32>
    %147 = arith.subf %132, %146 : vector<16x32xf32>
    %cst_35 = arith.constant 9.99999974E-6 : f32
    %148 = vector.broadcast %cst_35 : f32 to vector<16x1xf32>
    %149 = arith.addf %145, %148 : vector<16x1xf32>
    %150 = math.rsqrt %149 : vector<16x1xf32>
    %151 = vector.broadcast %150 : vector<16x1xf32> to vector<16x32xf32>
    %152 = arith.mulf %147, %151 : vector<16x32xf32>
    %153 = vector.broadcast %4 : vector<1x32xf32> to vector<16x32xf32>
    %154 = arith.mulf %152, %153 : vector<16x32xf32>
    %155 = vector.broadcast %5 : vector<1x32xf32> to vector<16x32xf32>
    %156 = arith.addf %154, %155 : vector<16x32xf32>
    %157 = arith.truncf %156 : vector<16x32xf32> to vector<16x32xbf16>
    %c0_36 = arith.constant 0 : index
    %c0_37 = arith.constant 0 : index
    %158 = vector.load %arg4[%c0_36, %c0_37] : memref<32x128xbf16, #tpu.memory_space<vmem>>, vector<32x128xbf16>
    %cst_38 = arith.constant dense<0.000000e+00> : vector<16x128xf32>
    %159 = tpu.matmul %157, %158, %cst_38 {dimension_numbers = #tpu.dot_dimension_numbers<[1], [0], [0], [1], [0, 0, 1, 1], [], []>} : vector<16x32xbf16>, vector<32x128xbf16>, vector<16x128xf32> -> vector<16x128xf32>
    %160 = vector.broadcast %9 : vector<1x128xf32> to vector<16x128xf32>
    %161 = arith.addf %159, %160 : vector<16x128xf32>
    %cst_39 = arith.constant 5.000000e-01 : f32
    %162 = vector.broadcast %cst_39 : f32 to vector<16x128xf32>
    %163 = arith.mulf %162, %161 : vector<16x128xf32>
    %cst_40 = arith.constant 0.707106769 : f32
    %164 = vector.broadcast %cst_40 : f32 to vector<16x128xf32>
    %165 = arith.mulf %161, %164 : vector<16x128xf32>
    %166 = math.erf %165 : vector<16x128xf32>
    %cst_41 = arith.constant 1.000000e+00 : f32
    %167 = vector.broadcast %cst_41 : f32 to vector<16x128xf32>
    %168 = arith.addf %167, %166 : vector<16x128xf32>
    %169 = arith.mulf %163, %168 : vector<16x128xf32>
    %170 = arith.truncf %169 : vector<16x128xf32> to vector<16x128xbf16>
    %c0_42 = arith.constant 0 : index
    %c0_43 = arith.constant 0 : index
    %171 = vector.load %arg5[%c0_42, %c0_43] : memref<128x32xbf16, #tpu.memory_space<vmem>>, vector<128x32xbf16>
    %cst_44 = arith.constant dense<0.000000e+00> : vector<16x32xf32>
    %172 = tpu.matmul %170, %171, %cst_44 {dimension_numbers = #tpu.dot_dimension_numbers<[1], [0], [0], [1], [0, 0, 1, 1], [], []>} : vector<16x128xbf16>, vector<128x32xbf16>, vector<16x32xf32> -> vector<16x32xf32>
    %173 = vector.broadcast %7 : vector<1x32xf32> to vector<16x32xf32>
    %174 = arith.addf %172, %173 : vector<16x32xf32>
    %175 = arith.addf %132, %174 : vector<16x32xf32>
    %c0_45 = arith.constant 0 : index
    %c0_46 = arith.constant 0 : index
    %176 = vector.load %arg6[%c0_45, %c0_46] : memref<16x32xf32, #tpu.memory_space<vmem>>, vector<16x32xf32>
    tpu.vector_store %arg6[%c0_45, %c0_46], %175 {strides = array<i32>} : memref<16x32xf32, #tpu.memory_space<vmem>>, vector<16x32xf32>,
    return
  }
}

</mosaic_0001>

<bundles_post_ra>
// kernel: gpt2_block.1
= control target key start
LH: loop header
LB: loop body
LE: loop exit
PB: predicated region body
PF: predicated region fallthrough
CT: control target
= control target key end

     0   :  { %vm28_vm0 = vcmask 261120   ;;  %s2054_s0 = inlined_call_operand.vmem [shape: f32[16,32], index: 0, kind: input, shape index: {}]   ;;  %s2055_s1 = inlined_call_operand.vmem [shape: f32[8,128], index: 1, kind: input, shape index: {}]   ;;  %s2056_s2 = inlined_call_operand.vmem [shape: bf16[32,96], index: 2, kind: input, shape index: {}]   ;;  %s2057_s3 = inlined_call_operand.vmem [shape: bf16[32,32], index: 3, kind: input, shape index: {}]   ;;  %s2058_s4 = inlined_call_operand.vmem [shape: bf16[32,128], index: 4, kind: input, shape index: {}]   ;;  %s2059_s5 = inlined_call_operand.vmem [shape: bf16[128,32], index: 5, kind: input, shape index: {}]   ;;  %s2060_s6 = inlined_call_operand.hbm [shape: f32[16,32], index: 6, kind: output, shape index: {}]  }
   0x1   :  { %v1765_v0 = vld [vmem:[%s2054_s0] sm:$0xff]  ;;  %v1770_v1 = vld [vmem:[%s2054_s0 + $0x8] sm:$0xff] }
   0x2   :  { %v29_v2 = vsel %vm28_vm0, %v1765_v0, 0.0  ;;  %v32_v3 = vsel %vm28_vm0, %v1770_v1, 0.0 }
   0x3   :  { %30 = vadd.xlane.f32.xlu0 %v29_v2 }
   0x7   :  { %33 = vadd.xlane.f32.xlu0 %v32_v3 }
   0x8   :  { %11 = vsyncpa [#allocation3], 0  ;;  %v1626_v14 = vld [vmem:[%s2056_s2] sm:$0xff]   ;;  %v1708_v15 = vmov 0.0   ;;  %v1627_v16 = vld [vmem:[%s2056_s2 + $0x8] sm:$0xff]   ;;  %vm1709_vm1 = vmmov 0   ;;  %v56_v21 = vlaneseq }
   0x9   :  { %1452 = vmatprep.subr.bf16.mxu0 %v1708_v15  ;;  %1472 = vmatprep.subr.bf16.mxu1 %v1708_v15  ;;  %v1800_v26 = vld [vmem:[%s2055_s1] sm:$0xff]  ;;  %s1710_s1 = smov 96   ;;  %vm147_vm2 = vcmask 64512   ;;  %v1711_v54 = vmov -1e+30   ;;  %s1712_s29 = smov 64  }
   0xa   :  { %1453 = vmatpush3.bf16.msra.mxu0 %v1626_v14  ;;  %1456 = vmatprep.mubr.msk.bf16.mxu0 %vm1709_vm1, %v1708_v15  ;;  %v1794_v24 = vshrl.u32 %v56_v21, 7  ;;  %v142_v53 = vand.u32 127, %v56_v21  ;;  %s1713_s30 = smov 88   ;;  %vm271_vm4 = vcmask 1043456   ;;  %s1714_s7 = smov 120   ;;  %vm1049_vm5 = vcmask 130048  }
   0xb   :  { %1454 = vmatprep.subr.bf16.mxu0 %v1708_v15  ;;  %1474 = vmatprep.mubr.msk.bf16.mxu1 %vm1709_vm1, %v1708_v15  ;;  %s1715_s8 = smov 56   ;;  %s1716_s9 = smov 80   ;;  %vm1052_vm6 = vcmask 195584  }
   0xc   :  { %v58_v25 = vsub.s32 0, %v1794_v24  ;;  %v64_v30 = vsub.s32 1, %v1794_v24  ;;  %v75_v39 = vsub.s32 6, %v1794_v24  ;;  %vm143_vm3 = vcmp.ge.s32.totalorder %v1794_v24, %v142_v53  ;;  %s1717_s10 = smov 112   ;;  %s1718_s11 = smov 48  }
   0xd   :  { %v1829_v55 = vsel %vm143_vm3, 0.0, %v1711_v54  ;;  %s1719_s12 = smov 72   ;;  %s1720_s13 = smov 104  }
   0xe   :  { %1455 = vmatpush3.bf16.msra.mxu0 %v1627_v16  ;;  %v59_v29 = vrot.slane %v1800_v26, %v58_v25  ;;  %v65_v34 = vrot.slane %v1800_v26, %v64_v30  ;;  %v76_v40 = vrot.slane %v1800_v26, %v75_v39  ;;  %s1721_s14 = smov 40   ;;  %s1722_s15 = smov 8  }
   0xf   :  { %1460 = vmatprep.subr.bf16.mxu0 %v1708_v15  ;;  %s1723_s16 = smov 16   ;;  %s1724_s21 = smov 24  }
  0x90   :  { %v31_v4 = vpop.xlane.xlu0 %30 }
  0x91   :  { %v36_v5 = vmul.f32 0.03125, %v31_v4 }
  0x93   :  { %v38_v6 = vsub.f32 %v1765_v0, %v36_v5 }
  0x94   :  { %v34_v7 = vpop.xlane.xlu0 %33 }
  0x95   :  { %v37_v8 = vmul.f32 0.03125, %v34_v7  ;;  %v40_v9 = vmul.f32 %v38_v6, %v38_v6 }
  0x97   :  { %v39_v10 = vsub.f32 %v1770_v1, %v37_v8  ;;  %v42_v11 = vsel %vm28_vm0, %v40_v9, 0.0 }
  0x98   :  { %43 = vadd.xlane.f32.xlu1 %v42_v11 }
  0x99   :  { %v41_v12 = vmul.f32 %v39_v10, %v39_v10 }
  0x9b   :  { %v45_v13 = vsel %vm28_vm0, %v41_v12, 0.0 }
  0x9c   :  { %46 = vadd.xlane.f32.xlu1 %v45_v13 }
 0x125   :  { %v44_v17 = vpop.xlane.xlu1 %43 }
 0x126   :  { %v48_v18 = vmul.f32 0.03125, %v44_v17 }
 0x128   :  { %v50_v19 = vadd.f32 1e-05, %v48_v18 }
 0x129   :  { %v47_v20 = vpop.xlane.xlu1 %46 }
 0x12a   :  { %1640 = vrsqrt.f32 %v50_v19  ;;  %v49_v22 = vmul.f32 0.03125, %v47_v20 }
 0x12c   :  { %v51_v23 = vadd.f32 1e-05, %v49_v22 }
 0x12e   :  { %1642 = vrsqrt.f32 %v51_v23 }
 0x134   :  { %v1641_v27 = vpop.eup %1640 }
 0x135   :  { %v54_v28 = vmul.f32 %v1641_v27, %v38_v6 }
 0x137   :  { %v60_v33 = vmul.f32 %v59_v29, %v54_v28 }
 0x138   :  { %v1643_v31 = vpop.eup %1642 }
 0x139   :  { %v55_v32 = vmul.f32 %v1643_v31, %v39_v10  ;;  %v66_v36 = vadd.f32 %v65_v34, %v60_v33 }
 0x13b   :  { %v61_v35 = vmul.f32 %v59_v29, %v55_v32 }
 0x13d   :  { %v67_v37 = vadd.f32 %v65_v34, %v61_v35 }
 0x13f   :  { %v68_v38 = vpack.c.bf16 %v67_v37, %v66_v36 }
 0x141   :  { %1457 = vmatmul.mubr.msk.bf16.vlgmr.msra.gmra.mrb[0].mxu0 %vm28_vm0, %v68_v38 }
 0x142   :  { %1462 = vmatprep.mubr.msk.bf16.mxu0 %vm1709_vm1, %v1708_v15 }
 0x214   :  { %v126_v41 = vpop.f32.mrb[0].mxu0 }
 0x215   :  { %v127_v42 = vadd.f32 %v126_v41, %v76_v40  ;;  %v1458_v43 = vpop.f32.mrb[1].mxu0 }
 0x216   :  { %v129_v44 = vpop.f32.mrb[2].mxu0 }
 0x217   :  { %v1810_v45 = vpack.c.bf16 %v127_v42, %v127_v42  ;;  %v130_v46 = vadd.f32 %v129_v44, %v76_v40  ;;  %v1459_v47 = vpop.f32.mrb[3].mxu0 }
 0x219   :  { %v1812_v48 = vpack.c.bf16 %v130_v46, %v130_v46  ;;  %145 = vrot.lane.b32.xlu0 %v1810_v45, %s1710_s1 }
 0x21b   :  { %194 = vrot.lane.b32.xlu1 %v1812_v48, %s1710_s1 }
 0x28b   :  { %v146_v49 = vpop.permute.xlu0 %145 }
 0x28c   :  { %v152_v50 = vsel %vm147_vm2, %v146_v49, 0 }
 0x28d   :  { %1461 = vmatpush3.bf16.xpose.msra.mxu0 %v152_v50  ;;  %v195_v51 = vpop.permute.xlu1 %194 }
 0x28e   :  { %1466 = vmatprep.subr.bf16.mxu0 %v1708_v15  ;;  %v200_v52 = vsel %vm147_vm2, %v195_v51, 0 }
 0x294   :  { %1463 = vmatmul.mubr.msk.bf16.vlgmr.msra.gmra.mrb[4].mxu0 %vm147_vm2, %v1810_v45 }
 0x295   :  { %1467 = vmatpush3.bf16.xpose.msra.mxu0 %v200_v52  ;;  %1468 = vmatprep.mubr.msk.bf16.mxu0 %vm1709_vm1, %v1708_v15 }
 0x296   :  { %1478 = vmatprep.subr.bf16.mxu0 %v1708_v15 }
 0x29c   :  { %1469 = vmatmul.mubr.msk.bf16.vlgmr.msra.gmra.mrb[8].mxu0 %vm147_vm2, %v1812_v48 }
 0x29d   :  { %1480 = vmatprep.mubr.msk.bf16.mxu0 %vm1709_vm1, %v1708_v15 }
 0x367   :  { %v188_v56 = vpop.f32.mrb[4].mxu0 }
 0x368   :  { %v189_v57 = vadd.f32 %v188_v56, %v1829_v55  ;;  %v1464_v58 = vpop.f32.mrb[5].mxu0 }
 0x369   :  { %v191_v59 = vpop.f32.mrb[6].mxu0 }
 0x36a   :  { %v1465_v60 = vpop.f32.mrb[7].mxu0  ;;  %v242_v61 = vsel %vm147_vm2, %v189_v57, -inf }
 0x36b   :  { %243 = vmax.xlane.f32.xlu1 %v242_v61 }
 0x36f   :  { %v236_v62 = vpop.f32.mrb[8].mxu0 }
 0x370   :  { %v237_v63 = vadd.f32 %v236_v62, %v1829_v55  ;;  %v1470_v2 = vpop.f32.mrb[9].mxu0 }
 0x371   :  { %v239_v3 = vpop.f32.mrb[10].mxu0 }
 0x372   :  { %v1471_v4 = vpop.f32.mrb[11].mxu0  ;;  %v245_v5 = vsel %vm147_vm2, %v237_v63, -inf }
 0x373   :  { %246 = vmax.xlane.f32.xlu0 %v245_v5 }
 0x37c   :  { %315 = vrot.lane.b32.xlu1 %v1812_v48, %s1712_s29 }
 0x380   :  { %365 = vrot.lane.b32.xlu1 %v1810_v45, %s1713_s30 }
 0x3f8   :  { %v244_v6 = vpop.xlane.xlu1 %243 }
 0x3f9   :  { %v248_v7 = vsub.f32 %v189_v57, %v244_v6 }
 0x3fb   :  { %v250_v8 = vmul.f32 1.442695, %v248_v7 }
 0x3fc   :  { %v316_v9 = vpop.permute.xlu1 %315 }
 0x3fd   :  { %1644 = vpow2.f32 %v250_v8  ;;  %v321_v10 = vsel %vm271_vm4, %v316_v9, 0 }
 0x3fe   :  { %1479 = vmatpush3.bf16.msra.mxu0 %v321_v10 }
 0x3ff   :  { %1490 = vmatprep.subr.bf16.mxu0 %v1708_v15 }
 0x400   :  { %v247_v11 = vpop.xlane.xlu0 %246  ;;  %v366_v20 = vpop.permute.xlu1 %365 }
 0x401   :  { %v249_v12 = vsub.f32 %v237_v63, %v247_v11  ;;  %v371_v29 = vsel %vm147_vm2, %v366_v20, 0 }
 0x403   :  { %v252_v13 = vmul.f32 1.442695, %v249_v12 }
 0x405   :  { %1646 = vpow2.f32 %v252_v13 }
 0x407   :  { %v1645_v14 = vpop.eup %1644 }
 0x408   :  { %v254_v16 = vsel %vm147_vm2, %v1645_v14, 0.0 }
 0x409   :  { %255 = vadd.xlane.f32.xlu0 %v254_v16 }
 0x40f   :  { %v1647_v17 = vpop.eup %1646 }
 0x410   :  { %v257_v18 = vsel %vm147_vm2, %v1647_v17, 0.0 }
 0x411   :  { %258 = vadd.xlane.f32.xlu1 %v257_v18 }
 0x41f   :  { %266 = vrot.lane.b32.xlu0 %v1810_v45, %s1712_s29 }
 0x422   :  { %415 = vrot.lane.b32.xlu1 %v1812_v48, %s1713_s30 }
 0x423   :  { %363 = vrot.lane.b32.xlu0 %v1810_v45, %s1714_s7 }
 0x426   :  { %413 = vrot.lane.b32.xlu1 %v1812_v48, %s1714_s7 }
 0x496   :  { %v256_v19 = vpop.xlane.xlu0 %255 }
 0x497   :  { %1648 = vrcp.f32 %v256_v19 }
 0x49a   :  { %v267_v21 = vpop.permute.xlu0 %266 }
 0x49b   :  { %v273_v22 = vsel %vm271_vm4, %v267_v21, 0 }
 0x49c   :  { %1473 = vmatpush3.bf16.msra.mxu1 %v273_v22 }
 0x49d   :  { %1484 = vmatprep.subr.bf16.mxu1 %v1708_v15 }
 0x49e   :  { %v259_v23 = vpop.xlane.xlu1 %258  ;;  %v364_v34 = vpop.permute.xlu0 %363 }
 0x49f   :  { %1650 = vrcp.f32 %v259_v23 }
 0x4a1   :  { %v1649_v25 = vpop.eup %1648 }
 0x4a2   :  { %v262_v27 = vmul.f32 %v1649_v25, %v1645_v14  ;;  %v416_v32 = vpop.permute.xlu1 %415 }
 0x4a3   :  { %v421_v35 = vsel %vm147_vm2, %v416_v32, 0 }
 0x4a4   :  { %v264_v28 = vpack.c.bf16 %v262_v27, %v262_v27 }
 0x4a6   :  { %1475 = vmatmul.mubr.msk.bf16.vlgmr.msra.gmra.mrb[0].mxu1 %vm147_vm2, %v264_v28  ;;  %v414_v36 = vpop.permute.xlu1 %413 }
 0x4a7   :  { %1485 = vmatpush3.bf16.xpose.msra.mxu1 %v371_v29  ;;  %1486 = vmatprep.mubr.msk.bf16.mxu1 %vm1709_vm1, %v1708_v15 }
 0x4a8   :  { %1496 = vmatprep.subr.bf16.mxu1 %v1708_v15 }
 0x4a9   :  { %v1651_v30 = vpop.eup %1650 }
 0x4aa   :  { %v263_v31 = vmul.f32 %v1651_v30, %v1647_v17 }
 0x4ac   :  { %v265_v33 = vpack.c.bf16 %v263_v31, %v263_v31 }
 0x4ae   :  { %1481 = vmatmul.mubr.msk.bf16.vlgmr.msra.gmra.mrb[12].mxu0 %vm147_vm2, %v265_v33  ;;  %1487 = vmatmul.mubr.msk.bf16.vlgmr.msra.gmra.mrb[4].mxu1 %vm147_vm2, %v364_v34 }
 0x4af   :  { %1491 = vmatpush3.bf16.xpose.msra.mxu0 %v421_v35  ;;  %1492 = vmatprep.mubr.msk.bf16.mxu0 %vm1709_vm1, %v1708_v15 }
 0x4b0   :  { %1502 = vmatprep.subr.bf16.mxu0 %v1708_v15  ;;  %1498 = vmatprep.mubr.msk.bf16.mxu1 %vm1709_vm1, %v1708_v15 }
 0x4b6   :  { %1493 = vmatmul.mubr.msk.bf16.vlgmr.msra.gmra.mrb[16].mxu0 %vm147_vm2, %v414_v36 }
 0x4b7   :  { %1504 = vmatprep.mubr.msk.bf16.mxu0 %vm1709_vm1, %v1708_v15 }
 0x579   :  { %v1863_v37 = vpop.f32.mrb[0].mxu1 }
 0x57a   :  { %v1476_v38 = vpop.f32.mrb[1].mxu1 }
 0x57b   :  { %v312_v39 = vpop.f32.mrb[2].mxu1 }
 0x57c   :  { %v1477_v40 = vpop.f32.mrb[3].mxu1 }
 0x581   :  { %v1865_v41 = vpop.f32.mrb[12].mxu0  ;;  %v407_v42 = vpop.f32.mrb[4].mxu1 }
 0x582   :  { %v408_v43 = vadd.f32 %v407_v42, %v1829_v55  ;;  %v1482_v44 = vpop.f32.mrb[13].mxu0  ;;  %v1488_v46 = vpop.f32.mrb[5].mxu1 }
 0x583   :  { %v360_v47 = vpop.f32.mrb[14].mxu0  ;;  %v410_v49 = vpop.f32.mrb[6].mxu1 }
 0x584   :  { %v1483_v50 = vpop.f32.mrb[15].mxu0  ;;  %v1489_v51 = vpop.f32.mrb[7].mxu1  ;;  %v463_v52 = vsel %vm147_vm2, %v408_v43, -inf }
 0x585   :  { %464 = vmax.xlane.f32.xlu0 %v463_v52 }
 0x589   :  { %v457_v53 = vpop.f32.mrb[16].mxu0 }
 0x58a   :  { %v458_v54 = vadd.f32 %v457_v53, %v1829_v55  ;;  %v1494_v56 = vpop.f32.mrb[17].mxu0 }
 0x58b   :  { %v460_v57 = vpop.f32.mrb[18].mxu0 }
 0x58c   :  { %v1495_v58 = vpop.f32.mrb[19].mxu0  ;;  %v466_v59 = vsel %vm147_vm2, %v458_v54, -inf }
 0x58d   :  { %467 = vmax.xlane.f32.xlu1 %v466_v59 }
 0x59e   :  { %535 = vrot.lane.b32.xlu1 %v1812_v48, %s1715_s8 }
 0x5a2   :  { %585 = vrot.lane.b32.xlu1 %v1810_v45, %s1716_s9 }
 0x5a6   :  { %635 = vrot.lane.b32.xlu1 %v1812_v48, %s1716_s9 }
 0x5aa   :  { %633 = vrot.lane.b32.xlu1 %v1812_v48, %s1717_s10 }
 0x612   :  { %v465_v60 = vpop.xlane.xlu0 %464 }
 0x613   :  { %v469_v61 = vsub.f32 %v408_v43, %v465_v60 }
 0x615   :  { %v471_v62 = vmul.f32 1.442695, %v469_v61 }
 0x617   :  { %1652 = vpow2.f32 %v471_v62 }
 0x61a   :  { %v468_v63 = vpop.xlane.xlu1 %467 }
 0x61b   :  { %v470_v2 = vsub.f32 %v458_v54, %v468_v63 }
 0x61d   :  { %v473_v3 = vmul.f32 1.442695, %v470_v2 }
 0x61e   :  { %v536_v4 = vpop.permute.xlu1 %535 }
 0x61f   :  { %1654 = vpow2.f32 %v473_v3  ;;  %v541_v5 = vsel %vm271_vm4, %v536_v4, 0 }
 0x620   :  { %1503 = vmatpush3.bf16.msra.mxu0 %v541_v5 }
 0x621   :  { %v1653_v6 = vpop.eup %1652  ;;  %1514 = vmatprep.subr.bf16.mxu0 %v1708_v15 }
 0x622   :  { %v475_v7 = vsel %vm147_vm2, %v1653_v6, 0.0  ;;  %v586_v18 = vpop.permute.xlu1 %585 }
 0x623   :  { %476 = vadd.xlane.f32.xlu0 %v475_v7  ;;  %v591_v22 = vsel %vm147_vm2, %v586_v18, 0 }
 0x626   :  { %v636_v21 = vpop.permute.xlu1 %635 }
 0x627   :  { %v641_v25 = vsel %vm147_vm2, %v636_v21, 0 }
 0x629   :  { %v1655_v8 = vpop.eup %1654 }
 0x62a   :  { %v478_v9 = vsel %vm147_vm2, %v1655_v8, 0.0  ;;  %v634_v28 = vpop.permute.xlu1 %633 }
 0x62b   :  { %479 = vadd.xlane.f32.xlu0 %v478_v9 }
 0x641   :  { %487 = vrot.lane.b32.xlu0 %v1810_v45, %s1715_s8 }
 0x645   :  { %583 = vrot.lane.b32.xlu0 %v1810_v45, %s1717_s10 }
 0x6b0   :  { %v477_v10 = vpop.xlane.xlu0 %476 }
 0x6b1   :  { %1656 = vrcp.f32 %v477_v10 }
 0x6b8   :  { %v480_v11 = vpop.xlane.xlu0 %479 }
 0x6b9   :  { %1658 = vrcp.f32 %v480_v11 }
 0x6bb   :  { %v1657_v12 = vpop.eup %1656 }
 0x6bc   :  { %v483_v13 = vmul.f32 %v1657_v12, %v1653_v6  ;;  %v488_v14 = vpop.permute.xlu0 %487 }
 0x6bd   :  { %v493_v16 = vsel %vm271_vm4, %v488_v14, 0 }
 0x6be   :  { %1497 = vmatpush3.bf16.msra.mxu1 %v493_v16  ;;  %v485_v17 = vpack.c.bf16 %v483_v13, %v483_v13 }
 0x6bf   :  { %1508 = vmatprep.subr.bf16.mxu1 %v1708_v15 }
 0x6c0   :  { %v584_v27 = vpop.permute.xlu0 %583 }
 0x6c1   :  { %1499 = vmatmul.mubr.msk.bf16.vlgmr.msra.gmra.mrb[8].mxu1 %vm147_vm2, %v485_v17 }
 0x6c2   :  { %1510 = vmatprep.mubr.msk.bf16.mxu1 %vm1709_vm1, %v1708_v15 }
 0x6c3   :  { %v1659_v19 = vpop.eup %1658 }
 0x6c4   :  { %v484_v20 = vmul.f32 %v1659_v19, %v1655_v8 }
 0x6c6   :  { %v486_v23 = vpack.c.bf16 %v484_v20, %v484_v20 }
 0x6c7   :  { %1509 = vmatpush3.bf16.xpose.msra.mxu1 %v591_v22 }
 0x6c8   :  { %1505 = vmatmul.mubr.msk.bf16.vlgmr.msra.gmra.mrb[20].mxu0 %vm147_vm2, %v486_v23  ;;  %1520 = vmatprep.subr.bf16.mxu1 %v1708_v15 }
 0x6c9   :  { %1515 = vmatpush3.bf16.xpose.msra.mxu0 %v641_v25  ;;  %1516 = vmatprep.mubr.msk.bf16.mxu0 %vm1709_vm1, %v1708_v15 }
 0x6ca   :  { %1526 = vmatprep.subr.bf16.mxu0 %v1708_v15 }
 0x6ce   :  { %1511 = vmatmul.mubr.msk.bf16.vlgmr.msra.gmra.mrb[12].mxu1 %vm147_vm2, %v584_v27 }
 0x6cf   :  { %1522 = vmatprep.mubr.msk.bf16.mxu1 %vm1709_vm1, %v1708_v15 }
 0x6d0   :  { %1517 = vmatmul.mubr.msk.bf16.vlgmr.msra.gmra.mrb[24].mxu0 %vm147_vm2, %v634_v28 }
 0x6d1   :  { %1528 = vmatprep.mubr.msk.bf16.mxu0 %vm1709_vm1, %v1708_v15 }
 0x794   :  { %v1899_v29 = vpop.f32.mrb[8].mxu1 }
 0x795   :  { %v1500_v30 = vpop.f32.mrb[9].mxu1 }
 0x796   :  { %v532_v31 = vpop.f32.mrb[10].mxu1 }
 0x797   :  { %v1501_v32 = vpop.f32.mrb[11].mxu1 }
 0x79b   :  { %v1901_v33 = vpop.f32.mrb[20].mxu0 }
 0x79c   :  { %v1611_v34 = vpack.i.bf16 %v1901_v33, %v1899_v29  ;;  %v1506_v35 = vpop.f32.mrb[21].mxu0 }
 0x79d   :  { %v580_v36 = vpop.f32.mrb[22].mxu0 }
 0x79e   :  { %v1507_v38 = vpop.f32.mrb[23].mxu0 }
 0x7a1   :  { %v627_v39 = vpop.f32.mrb[12].mxu1 }
 0x7a2   :  { %v628_v40 = vadd.f32 %v627_v39, %v1829_v55  ;;  %v1512_v42 = vpop.f32.mrb[13].mxu1 }
 0x7a3   :  { %v630_v43 = vpop.f32.mrb[14].mxu1  ;;  %v677_v44 = vpop.f32.mrb[24].mxu0 }
 0x7a4   :  { %v678_v46 = vadd.f32 %v677_v44, %v1829_v55  ;;  %v1513_v47 = vpop.f32.mrb[15].mxu1  ;;  %v1518_v49 = vpop.f32.mrb[25].mxu0  ;;  %v683_v50 = vsel %vm147_vm2, %v628_v40, -inf }
 0x7a5   :  { %684 = vmax.xlane.f32.xlu0 %v683_v50  ;;  %v680_v51 = vpop.f32.mrb[26].mxu0 }
 0x7a6   :  { %v1519_v52 = vpop.f32.mrb[27].mxu0  ;;  %v686_v53 = vsel %vm147_vm2, %v678_v46, -inf }
 0x7a7   :  { %687 = vmax.xlane.f32.xlu1 %v686_v53 }
 0x7b8   :  { %755 = vrot.lane.b32.xlu1 %v1812_v48, %s1718_s11 }
 0x7bc   :  { %805 = vrot.lane.b32.xlu1 %v1810_v45, %s1719_s12 }
 0x7c0   :  { %855 = vrot.lane.b32.xlu1 %v1812_v48, %s1719_s12 }
 0x7c4   :  { %853 = vrot.lane.b32.xlu1 %v1812_v48, %s1720_s13 }
 0x832   :  { %v685_v54 = vpop.xlane.xlu0 %684 }
 0x833   :  { %v689_v56 = vsub.f32 %v628_v40, %v685_v54 }
 0x834   :  { %v688_v57 = vpop.xlane.xlu1 %687 }
 0x835   :  { %v691_v58 = vmul.f32 1.442695, %v689_v56  ;;  %v690_v59 = vsub.f32 %v678_v46, %v688_v57 }
 0x837   :  { %1660 = vpow2.f32 %v691_v58  ;;  %v693_v60 = vmul.f32 1.442695, %v690_v59 }
 0x838   :  { %v756_v61 = vpop.permute.xlu1 %755 }
 0x839   :  { %1662 = vpow2.f32 %v693_v60  ;;  %v761_v62 = vsel %vm271_vm4, %v756_v61, 0 }
 0x83a   :  { %1527 = vmatpush3.bf16.msra.mxu0 %v761_v62 }
 0x83b   :  { %1538 = vmatprep.subr.bf16.mxu0 %v1708_v15 }
 0x83c   :  { %v806_v10 = vpop.permute.xlu1 %805 }
 0x83d   :  { %v811_v17 = vsel %vm147_vm2, %v806_v10, 0 }
 0x840   :  { %v856_v16 = vpop.permute.xlu1 %855 }
 0x841   :  { %v1661_v63 = vpop.eup %1660  ;;  %v861_v19 = vsel %vm147_vm2, %v856_v16, 0 }
 0x842   :  { %v695_v2 = vsel %vm147_vm2, %v1661_v63, 0.0 }
 0x843   :  { %v1663_v3 = vpop.eup %1662  ;;  %696 = vadd.xlane.f32.xlu0 %v695_v2 }
 0x844   :  { %v698_v4 = vsel %vm147_vm2, %v1663_v3, 0.0  ;;  %v854_v21 = vpop.permute.xlu1 %853 }
 0x847   :  { %699 = vadd.xlane.f32.xlu0 %v698_v4 }
 0x85d   :  { %707 = vrot.lane.b32.xlu0 %v1810_v45, %s1718_s11 }
 0x861   :  { %803 = vrot.lane.b32.xlu0 %v1810_v45, %s1720_s13 }
 0x8d0   :  { %v697_v5 = vpop.xlane.xlu0 %696 }
 0x8d1   :  { %1664 = vrcp.f32 %v697_v5 }
 0x8d4   :  { %v700_v6 = vpop.xlane.xlu0 %699 }
 0x8d5   :  { %1666 = vrcp.f32 %v700_v6 }
 0x8d8   :  { %v708_v7 = vpop.permute.xlu0 %707 }
 0x8d9   :  { %v713_v8 = vsel %vm271_vm4, %v708_v7, 0  ;;  %v1628_v7 = vld [vmem:[%s2057_s3] sm:$0xff]  }
 0x8da   :  { %1521 = vmatpush3.bf16.msra.mxu1 %v713_v8  ;;  %v1629_v8 = vld [vmem:[%s2057_s3 + $0x8] sm:$0xff]  }
 0x8db   :  { %v1665_v9 = vpop.eup %1664  ;;  %1532 = vmatprep.subr.bf16.mxu1 %v1708_v15 }
 0x8dc   :  { %v703_v11 = vmul.f32 %v1665_v9, %v1661_v63  ;;  %v804_v20 = vpop.permute.xlu0 %803 }
 0x8de   :  { %v705_v12 = vpack.c.bf16 %v703_v11, %v703_v11 }
 0x8df   :  { %v1667_v13 = vpop.eup %1666 }
 0x8e0   :  { %v704_v14 = vmul.f32 %v1667_v13, %v1663_v3  ;;  %1523 = vmatmul.mubr.msk.bf16.vlgmr.msra.gmra.mrb[16].mxu1 %vm147_vm2, %v705_v12 }
 0x8e1   :  { %1534 = vmatprep.mubr.msk.bf16.mxu1 %vm1709_vm1, %v1708_v15 }
 0x8e2   :  { %v706_v18 = vpack.c.bf16 %v704_v14, %v704_v14 }
 0x8e3   :  { %1533 = vmatpush3.bf16.xpose.msra.mxu1 %v811_v17 }
 0x8e4   :  { %1529 = vmatmul.mubr.msk.bf16.vlgmr.msra.gmra.mrb[28].mxu0 %vm147_vm2, %v706_v18  ;;  %1544 = vmatprep.subr.bf16.mxu1 %v1708_v15 }
 0x8e5   :  { %1539 = vmatpush3.bf16.xpose.msra.mxu0 %v861_v19  ;;  %1540 = vmatprep.mubr.msk.bf16.mxu0 %vm1709_vm1, %v1708_v15 }
 0x8e6   :  { %1550 = vmatprep.subr.bf16.mxu0 %v1708_v15 }
 0x8ea   :  { %1535 = vmatmul.mubr.msk.bf16.vlgmr.msra.gmra.mrb[20].mxu1 %vm147_vm2, %v804_v20 }
 0x8eb   :  { %1546 = vmatprep.mubr.msk.bf16.mxu1 %vm1709_vm1, %v1708_v15 }
 0x8ec   :  { %1541 = vmatmul.mubr.msk.bf16.vlgmr.msra.gmra.mrb[32].mxu0 %vm147_vm2, %v854_v21 }
 0x8ed   :  { %1552 = vmatprep.mubr.msk.bf16.mxu0 %vm1709_vm1, %v1708_v15 }
 0x9b3   :  { %v749_v22 = vpop.f32.mrb[16].mxu1 }
 0x9b4   :  { %v1524_v23 = vpop.f32.mrb[17].mxu1 }
 0x9b5   :  { %v752_v25 = vpop.f32.mrb[18].mxu1 }
 0x9b6   :  { %v1525_v27 = vpop.f32.mrb[19].mxu1 }
 0x9b7   :  { %v797_v28 = vpop.f32.mrb[28].mxu0 }
 0x9b8   :  { %v1616_v30 = vpack.i.bf16 %v797_v28, %v749_v22  ;;  %v1530_v31 = vpop.f32.mrb[29].mxu0 }
 0x9b9   :  { %v800_v32 = vpop.f32.mrb[30].mxu0 }
 0x9ba   :  { %v1531_v35 = vpop.f32.mrb[31].mxu0 }
 0x9bd   :  { %v847_v36 = vpop.f32.mrb[20].mxu1 }
 0x9be   :  { %v848_v38 = vadd.f32 %v847_v36, %v1829_v55  ;;  %v1536_v39 = vpop.f32.mrb[21].mxu1 }
 0x9bf   :  { %v850_v40 = vpop.f32.mrb[22].mxu1  ;;  %v897_v42 = vpop.f32.mrb[32].mxu0 }
 0x9c0   :  { %v898_v43 = vadd.f32 %v897_v42, %v1829_v55  ;;  %v1537_v44 = vpop.f32.mrb[23].mxu1  ;;  %v1542_v46 = vpop.f32.mrb[33].mxu0  ;;  %v903_v47 = vsel %vm147_vm2, %v848_v38, -inf  ;;  %v1062_v42 = vsub.s32 4, %v1794_v24 }
 0x9c1   :  { %904 = vmax.xlane.f32.xlu0 %v903_v47  ;;  %v900_v49 = vpop.f32.mrb[34].mxu0 }
 0x9c2   :  { %v1543_v50 = vpop.f32.mrb[35].mxu0  ;;  %v906_v51 = vsel %vm147_vm2, %v898_v43, -inf }
 0x9c3   :  { %907 = vmax.xlane.f32.xlu1 %v906_v51 }
 0x9d4   :  { %975 = vrot.lane.b32.xlu1 %v1812_v48, %s1721_s14 }
 0x9d8   :  { %1612 = vrot.lane.b32.xlu1 %v1611_v34, %s1722_s15 }
 0x9dc   :  { %1617 = vrot.lane.b32.xlu1 %v1616_v30, %s1723_s16 }
 0xa4e   :  { %v905_v55 = vpop.xlane.xlu0 %904 }
 0xa4f   :  { %v909_v52 = vsub.f32 %v848_v38, %v905_v55 }
 0xa50   :  { %v908_v53 = vpop.xlane.xlu1 %907 }
 0xa51   :  { %v911_v54 = vmul.f32 1.442695, %v909_v52  ;;  %v910_v56 = vsub.f32 %v898_v43, %v908_v53  ;;  %v1063_v43 = vrot.slane %v1800_v26, %v1062_v42 }
 0xa53   :  { %1668 = vpow2.f32 %v911_v54  ;;  %v913_v57 = vmul.f32 1.442695, %v910_v56 }
 0xa54   :  { %v976_v58 = vpop.permute.xlu1 %975 }
 0xa55   :  { %1670 = vpow2.f32 %v913_v57  ;;  %v981_v59 = vsel %vm271_vm4, %v976_v58, 0 }
 0xa56   :  { %1551 = vmatpush3.bf16.msra.mxu0 %v981_v59 }
 0xa57   :  { %1564 = vmatprep.subr.bf16.mxu0 %v1708_v15 }
 0xa58   :  { %v1613_v19 = vpop.permute.xlu1 %1612 }
 0xa59   :  { %v1615_v21 = vunpack.i.h.bf16 %v1613_v19  ;;  %v1614_v22 = vunpack.i.l.bf16 %v1613_v19  ;;  %v1634_v19 = vld [vmem:[%s2059_s5 + $0x10] sm:$0xff]  }
 0xa5b   :  { %v1048_v28 = vsel %vm147_vm2, %v1865_v41, %v1615_v21  ;;  %v1047_v30 = vsel %vm147_vm2, %v1863_v37, %v1614_v22  ;;  %v1636_v21 = vld [vmem:[%s2059_s5 + $0x20] sm:$0xff]   ;;  %v1637_v22 = vld [vmem:[%s2059_s5 + $0x28] sm:$0xff]  }
 0xa5c   :  { %v1618_v20 = vpop.permute.xlu1 %1617 }
 0xa5d   :  { %v1669_v48 = vpop.eup %1668  ;;  %v1620_v23 = vunpack.i.h.bf16 %v1618_v20  ;;  %v1619_v25 = vunpack.i.l.bf16 %v1618_v20  ;;  %v1635_v20 = vld [vmem:[%s2059_s5 + $0x18] sm:$0xff]  }
 0xa5e   :  { %v915_v29 = vsel %vm147_vm2, %v1669_v48, 0.0 }
 0xa5f   :  { %v1671_v33 = vpop.eup %1670  ;;  %916 = vadd.xlane.f32.xlu0 %v915_v29  ;;  %v1050_v35 = vsel %vm1049_vm5, %v1047_v30, %v1619_v25  ;;  %v1051_v36 = vsel %vm1049_vm5, %v1048_v28, %v1620_v23  ;;  %v1638_v23 = vld [vmem:[%s2059_s5 + $0x30] sm:$0xff]   ;;  %v1639_v25 = vld [vmem:[%s2059_s5 + $0x38] sm:$0xff]  }
 0xa60   :  { %v918_v34 = vsel %vm147_vm2, %v1671_v33, 0.0 }
 0xa63   :  { %919 = vadd.xlane.f32.xlu0 %v918_v34  ;;  %v1631_v34 = vld [vmem:[%s2058_s4 + $0x8] sm:$0xff]  }
 0xa79   :  { %927 = vrot.lane.b32.xlu0 %v1810_v45, %s1721_s14 }
 0xaec   :  { %v917_v60 = vpop.xlane.xlu0 %916 }
 0xaed   :  { %1672 = vrcp.f32 %v917_v60  ;;  %v1632_v60 = vld [vmem:[%s2059_s5] sm:$0xff]  }
 0xaf0   :  { %v920_v61 = vpop.xlane.xlu0 %919 }
 0xaf1   :  { %1674 = vrcp.f32 %v920_v61  ;;  %v1633_v61 = vld [vmem:[%s2059_s5 + $0x8] sm:$0xff]   ;;  %s1725_s5 = smov [#allocation2]  }
 0xaf2   :  { %s1354_s13 = sshll.u32 %s1725_s5, 4  ;;  %s1355_s13 = int_to_ptr.vmem [resolvable:$true] %s1354_s13 }
 0xaf3   :  { %s1684_s14 = scalar_lea.vmem %s1355_s13, 256  ;;  %p1689_p1 = scmp.lt.s32.totalorder %s1355_s13, %s1355_s13 }
 0xaf4   :  { %v928_v62 = vpop.permute.xlu0 %927  ;;  %p1685_p0 = scmp.ne.s32.totalorder %s1355_s13, %s1684_s14  ;;  %p1690_p2 = scmp.lt.s32.totalorder %s1684_s14, %s1684_s14 }
 0xaf5   :  { %v933_v63 = vsel %vm271_vm4, %v928_v62, 0 }
 0xaf6   :  { %1545 = vmatpush3.bf16.msra.mxu1 %v933_v63  ;;  %p1691_p3 = por %p1690_p2, %p1689_p1 }
 0xaf7   :  { %v1673_v2 = vpop.eup %1672  ;;  %1556 = vmatprep.subr.bf16.mxu1 %v1708_v15 }
 0xaf8   :  { %v923_v3 = vmul.f32 %v1673_v2, %v1669_v48  ;;  %p1692_p4 = pnand %p1691_p3, %p1685_p0 }
 0xafa   :  { %v925_v4 = vpack.c.bf16 %v923_v3, %v923_v3 }
 0xafb   :  { %v1675_v5 = vpop.eup %1674 }
 0xafc   :  { %v924_v6 = vmul.f32 %v1675_v5, %v1671_v33  ;;  %1547 = vmatmul.mubr.msk.bf16.vlgmr.msra.gmra.mrb[24].mxu1 %vm147_vm2, %v925_v4  ;;  %v1630_v33 = vld [vmem:[%s2058_s4] sm:$0xff]  }
 0xafd   :  { %1560 = vmatprep.mubr.msk.bf16.mxu1 %vm1709_vm1, %v1708_v15  ;;  %1557 = vmatpush3.bf16.msra.mxu1 %v1628_v7 }
 0xafe   :  { %v926_v45 = vpack.c.bf16 %v924_v6, %v924_v6  ;;  %1558 = vmatprep.subr.bf16.mxu1 %v1708_v15  ;;  %v1150_v6 = vsub.s32 2, %v1794_v24 }
 0xb00   :  { %1553 = vmatmul.mubr.msk.bf16.vlgmr.msra.gmra.mrb[36].mxu0 %vm147_vm2, %v926_v45  ;;  %v1151_v7 = vrot.slane %v1800_v26, %v1150_v6 }
 0xb01   :  { %1568 = vmatprep.mubr.msk.bf16.mxu0 %vm1709_vm1, %v1708_v15  ;;  %1559 = vmatpush3.bf16.msra.mxu1 %v1629_v8 }
 0xb02   :  { %1572 = vmatprep.subr.bf16.mxu1 %v1708_v15  ;;  %1565 = vmatpush3.bf16.msra.mxu0 %v1630_v33 }
 0xb03   :  { %1566 = vmatprep.subr.bf16.mxu0 %v1708_v15 }
 0xb06   :  { %1567 = vmatpush3.bf16.msra.mxu0 %v1631_v34 }
 0xbcf   :  { %v969_v9 = vpop.f32.mrb[24].mxu1 }
 0xbd0   :  { %v1548_v10 = vpop.f32.mrb[25].mxu1 }
 0xbd1   :  { %v972_v11 = vpop.f32.mrb[26].mxu1 }
 0xbd2   :  { %v1549_v12 = vpop.f32.mrb[27].mxu1 }
 0xbd3   :  { %v1017_v13 = vpop.f32.mrb[36].mxu0 }
 0xbd4   :  { %v1621_v14 = vpack.i.bf16 %v1017_v13, %v969_v9  ;;  %v1554_v16 = vpop.f32.mrb[37].mxu0  ;;  %v1156_v9 = vsub.s32 3, %v1794_v24 }
 0xbd5   :  { %v1020_v17 = vpop.f32.mrb[38].mxu0 }
 0xbd6   :  { %1622 = vrot.lane.b32.xlu0 %v1621_v14, %s1724_s21  ;;  %v1555_v18 = vpop.f32.mrb[39].mxu0  ;;  %v1157_v13 = vrot.slane %v1800_v26, %v1156_v9 }
 0xc48   :  { %v1623_v27 = vpop.permute.xlu0 %1622 }
 0xc49   :  { %v1625_v31 = vunpack.i.h.bf16 %v1623_v27  ;;  %v1624_v32 = vunpack.i.l.bf16 %v1623_v27  ;;  %v1167_v27 = vsub.s32 7, %v1794_v24 }
 0xc4b   :  { %v1054_v38 = vsel %vm1052_vm6, %v1051_v36, %v1625_v31  ;;  %v1053_v39 = vsel %vm1052_vm6, %v1050_v35, %v1624_v32  ;;  %v1168_v28 = vrot.slane %v1800_v26, %v1167_v27 }
 0xc4c   :  { %v1055_v40 = vpack.c.bf16 %v1054_v38, %v1053_v39 }
 0xc4e   :  { %1561 = vmatmul.mubr.msk.bf16.vlgmr.msra.gmra.mrb[28].mxu1 %vm28_vm0, %v1055_v40 }
 0xc4f   :  { %1588 = vmatprep.mubr.msk.bf16.mxu1 %vm1709_vm1, %v1708_v15  ;;  %1573 = vmatpush3.bf16.msra.mxu1 %v1632_v60 }
 0xc50   :  { %1574 = vmatprep.subr.bf16.mxu1 %v1708_v15 }
 0xc53   :  { %1575 = vmatpush3.bf16.msra.mxu1 %v1633_v61 }
 0xc54   :  { %1576 = vmatprep.subr.bf16.mxu1 %v1708_v15 }
 0xc57   :  { %1577 = vmatpush3.bf16.msra.mxu1 %v1634_v19 }
 0xc58   :  { %1578 = vmatprep.subr.bf16.mxu1 %v1708_v15 }
 0xc5b   :  { %1579 = vmatpush3.bf16.msra.mxu1 %v1635_v20 }
 0xc5c   :  { %1580 = vmatprep.subr.bf16.mxu1 %v1708_v15 }
 0xc5f   :  { %1581 = vmatpush3.bf16.msra.mxu1 %v1636_v21 }
 0xc60   :  { %1582 = vmatprep.subr.bf16.mxu1 %v1708_v15 }
 0xc63   :  { %1583 = vmatpush3.bf16.msra.mxu1 %v1637_v22 }
 0xc64   :  { %1584 = vmatprep.subr.bf16.mxu1 %v1708_v15 }
 0xc67   :  { %1585 = vmatpush3.bf16.msra.mxu1 %v1638_v23 }
 0xc68   :  { %1586 = vmatprep.subr.bf16.mxu1 %v1708_v15 }
 0xc6b   :  { %1587 = vmatpush3.bf16.msra.mxu1 %v1639_v25 }
 0xd21   :  { %v1113_v41 = vpop.f32.mrb[28].mxu1 }
 0xd22   :  { %v1114_v44 = vadd.f32 %v1113_v41, %v1063_v43  ;;  %v1562_v46 = vpop.f32.mrb[29].mxu1 }
 0xd23   :  { %v1116_v37 = vpop.f32.mrb[30].mxu1 }
 0xd24   :  { %v1977_v47 = vadd.f32 %v1114_v44, %v1765_v0  ;;  %v1117_v49 = vadd.f32 %v1116_v37, %v1063_v43  ;;  %v1563_v50 = vpop.f32.mrb[31].mxu1 }
 0xd26   :  { %v1980_v51 = vadd.f32 %v1117_v49, %v1770_v1  ;;  %v1122_v55 = vsel %vm28_vm0, %v1977_v47, 0.0 }
 0xd27   :  { %1123 = vadd.xlane.f32.xlu1 %v1122_v55  ;;  %v1254_v55 = vsub.s32 5, %v1794_v24 }
 0xd28   :  { %v1125_v52 = vsel %vm28_vm0, %v1980_v51, 0.0 }
 0xd29   :  { %1126 = vadd.xlane.f32.xlu0 %v1125_v52  ;;  %v1255_v52 = vrot.slane %v1800_v26, %v1254_v55 }
 0xdb4   :  { %v1124_v53 = vpop.xlane.xlu1 %1123 }
 0xdb5   :  { %v1128_v54 = vmul.f32 0.03125, %v1124_v53 }
 0xdb6   :  { %v1127_v56 = vpop.xlane.xlu0 %1126 }
 0xdb7   :  { %v1130_v57 = vsub.f32 %v1977_v47, %v1128_v54  ;;  %v1129_v0 = vmul.f32 0.03125, %v1127_v56 }
 0xdb9   :  { %v1131_v58 = vsub.f32 %v1980_v51, %v1129_v0  ;;  %v1132_v59 = vmul.f32 %v1130_v57, %v1130_v57 }
 0xdbb   :  { %v1134_v1 = vsel %vm28_vm0, %v1132_v59, 0.0  ;;  %v1133_v48 = vmul.f32 %v1131_v58, %v1131_v58 }
 0xdbc   :  { %1135 = vadd.xlane.f32.xlu0 %v1134_v1 }
 0xdbd   :  { %v1137_v29 = vsel %vm28_vm0, %v1133_v48, 0.0 }
 0xdc0   :  { %1138 = vadd.xlane.f32.xlu0 %v1137_v29 }
 0xe49   :  { %v1136_v62 = vpop.xlane.xlu0 %1135 }
 0xe4a   :  { %v1140_v63 = vmul.f32 0.03125, %v1136_v62 }
 0xe4c   :  { %v1142_v2 = vadd.f32 1e-05, %v1140_v63 }
 0xe4d   :  { %v1139_v3 = vpop.xlane.xlu0 %1138 }
 0xe4e   :  { %1676 = vrsqrt.f32 %v1142_v2  ;;  %v1141_v4 = vmul.f32 0.03125, %v1139_v3 }
 0xe50   :  { %v1143_v5 = vadd.f32 1e-05, %v1141_v4 }
 0xe52   :  { %1678 = vrsqrt.f32 %v1143_v5 }
 0xe58   :  { %v1677_v45 = vpop.eup %1676 }
 0xe59   :  { %v1146_v8 = vmul.f32 %v1677_v45, %v1130_v57 }
 0xe5b   :  { %v1152_v11 = vmul.f32 %v1151_v7, %v1146_v8 }
 0xe5c   :  { %v1679_v10 = vpop.eup %1678 }
 0xe5d   :  { %v1147_v12 = vmul.f32 %v1679_v10, %v1131_v58  ;;  %v1158_v16 = vadd.f32 %v1157_v13, %v1152_v11 }
 0xe5f   :  { %v1153_v14 = vmul.f32 %v1151_v7, %v1147_v12 }
 0xe61   :  { %v1159_v17 = vadd.f32 %v1157_v13, %v1153_v14 }
 0xe63   :  { %v1160_v18 = vpack.c.bf16 %v1159_v17, %v1158_v16 }
 0xe65   :  { %1569 = vmatmul.mubr.msk.bf16.vlgmr.msra.gmra.mrb[40].mxu0 %vm28_vm0, %v1160_v18 }
 0xf38   :  { %v1218_v30 = vpop.f32.mrb[40].mxu0 }
 0xf39   :  { %v1219_v31 = vadd.f32 %v1218_v30, %v1168_v28  ;;  %v1570_v32 = vpop.f32.mrb[41].mxu0 }
 0xf3a   :  { %v1221_v35 = vpop.f32.mrb[42].mxu0 }
 0xf3b   :  { %v1227_v36 = vmul.f32 0.70710677, %v1219_v31  ;;  %v1222_v38 = vadd.f32 %v1221_v35, %v1168_v28  ;;  %v1571_v39 = vpop.f32.mrb[43].mxu0  ;;  %v1225_v41 = vmul.f32 0.5, %v1219_v31 }
 0xf3d   :  { %1680 = verf.f32 %v1227_v36  ;;  %v1228_v40 = vmul.f32 0.70710677, %v1222_v38  ;;  %v1226_v44 = vmul.f32 0.5, %v1222_v38 }
 0xf3f   :  { %1682 = verf.f32 %v1228_v40 }
 0xf47   :  { %v1681_v15 = vpop.eup %1680 }
 0xf48   :  { %v1231_v42 = vadd.f32 1.0, %v1681_v15 }
 0xf49   :  { %v1683_v43 = vpop.eup %1682 }
 0xf4a   :  { %v1232_v46 = vadd.f32 1.0, %v1683_v43  ;;  %v1233_v37 = vmul.f32 %v1231_v42, %v1225_v41 }
 0xf4c   :  { %v1234_v49 = vmul.f32 %v1232_v46, %v1226_v44 }
 0xf4e   :  { %v1235_v50 = vpack.c.bf16 %v1234_v49, %v1233_v37 }
 0xf50   :  { %1589 = vmatmul.mubr.bf16.vlgmr.msra.gmra.mrb[32].mxu1 %v1235_v50 }
0x1023   :  { %v1338_v53 = vpop.f32.mrb[32].mxu1 }
0x1024   :  { %v1339_v54 = vadd.f32 %v1338_v53, %v1255_v52  ;;  %v1590_v56 = vpop.f32.mrb[33].mxu1 }
0x1025   :  { %v1341_v57 = vpop.f32.mrb[34].mxu1 }
0x1026   :  { %v1345_v0 = vadd.f32 %v1339_v54, %v1977_v47  ;;  %v1342_v58 = vadd.f32 %v1341_v57, %v1255_v52  ;;  %v1591_v59 = vpop.f32.mrb[35].mxu1 }
0x1028   :  { %1347 = vst.msk [vmem:[#allocation2] sm:$0xff] %vm28_vm0, %v1345_v0  ;;  %v1346_v1 = vadd.f32 %v1342_v58, %v1980_v51 }
0x102a   :  { %1348 = vst.msk [vmem:[#allocation2 + $0x8] sm:$0xff] %vm28_vm0, %v1346_v1 }
0x102b   :  { %1695 = shalt.err (!%p1692_p4)
}
0x102c   :  { %s1696_s18 = scalar_lea.hbm %s2060_s6, 256 }
0x102d   :  { %p1697_p5 = scmp.ne.s32.totalorder %s2060_s6, %s1696_s18  ;;  %p1700_p6 = scmp.lt.u32.totalorder %s1696_s18, %s2060_s6 }
0x102f   :  { %p1702_p7 = pnand %p1700_p6, %p1697_p5 }
0x1031   :  { %1705 = shalt.err (!%p1702_p7)
}
0x1032   :  { %s1726_s22 = smov 128  }
0x1033   :  { %1360 = dma.vmem_to_hbm [thread:$0]  %s1355_s13, 256, %s2060_s6, [#allocation3], %s1726_s22, %s1726_s22, %s1722_s15  }
0x1034   :  { %1706 = dma.done.wait [#allocation3], 256  }
0x1035   :  { %1707 = vsyncadd [#allocation3], 4294967040 }
0x1036   :  { %1364 = vsyncpa [#allocation3], 1 }

</bundles_post_ra>
